<compile_context>
chip_gen: v6e
topology: v6e:2x2x1
jax: 0.10.0
libtpu: 0.0.40
codegen_flags: <defaults>
</compile_context>

<pallas_src>
import jax
import jax.numpy as jnp
from jax import lax
from jax.experimental import pallas as pl
from jax.experimental.pallas import tpu as pltpu


def _ru(x, m):
    return (x + m - 1) // m * m


# ------------------------- fused whole-TCN kernel -------------------------- #

def _make_tcn_kernel(cfgs, TL, T, n_w, op_dtype):
    """cfgs: per-layer static config dicts (cin_p, cout_p, K, d, pad, has_ds, is_last)."""
    carry = T > 1

    def kernel(*refs):
        x_ref = refs[0]
        w_refs = refs[1:1 + n_w]
        y_ref = refs[1 + n_w]
        scratch = refs[2 + n_w:]          # per padded layer: (prev_x, prev_h)

        t = pl.program_id(1)

        # Reset the carried causal history at the start of every batch row.
        if carry and len(scratch) > 0:
            @pl.when(t == 0)
            def _():
                for s in scratch:
                    s[...] = jnp.zeros(s.shape, s.dtype)

        def tap_view(cur, prev_ref, shift):
            """cur shifted right by `shift` lanes; lanes < shift are back-filled
            from the previous time tile (zeros on the first tile)."""
            if shift == 0:
                return cur
            rolled = pltpu.roll(cur, shift, axis=1)
            if prev_ref is None:
                fill = jnp.zeros_like(rolled)
            else:
                fill = pltpu.roll(prev_ref[...], shift, axis=1)
            lane = lax.broadcasted_iota(jnp.int32, rolled.shape, 1)
            return jnp.where(lane < shift, fill, rolled)

        cur = x_ref[...].astype(op_dtype)            # (cin_p0, TL)

        wi = si = 0
        for c in cfgs:
            K, d, cout_p = c["K"], c["d"], c["cout_p"]
            has_ds, is_last = c["has_ds"], c["is_last"]
            w1f, b1f, w2f, b2f = w_refs[wi:wi + 4]
            wi += 4
            if carry and c["pad"] > 0:
                px, ph = scratch[si:si + 2]
                si += 2
            else:
                px = ph = None

            x_in = cur                                # (cin_p, TL) op_dtype

            # ---- conv1 (+ fused 1x1 downsample rows): ONE MXU matmul ----
            s1 = jnp.concatenate(
                [tap_view(x_in, px, (K - 1 - j) * d) for j in range(K)], axis=0)
            f1 = jnp.dot(w1f[...], s1,
                         preferred_element_type=jnp.float32) + b1f[...]
            if has_ds:
                h = f1[:cout_p]                        # conv1 pre-activation
                res = f1[cout_p:]                      # 1x1 downsample result
            else:
                h = f1
                res = x_in.astype(jnp.float32)
            if not is_last:
                h = jnp.maximum(h, 0.0)                # relu1
            # dropout1: identity (eval mode)
            h_op = h.astype(op_dtype)

            # ---- conv2: ONE MXU matmul ----
            s2 = jnp.concatenate(
                [tap_view(h_op, ph, (K - 1 - j) * d) for j in range(K)], axis=0)
            out = jnp.dot(w2f[...], s2,
                          preferred_element_type=jnp.float32) + b2f[...]
            if not is_last:
                out = jnp.maximum(out, 0.0)            # relu2
            # dropout2: identity (eval mode)

            y = out + res
            if not is_last:
                y = jnp.maximum(y, 0.0)                # final ReLU of TemporalBlock

            # ---- carry this tile as the next tile's causal halo ----
            if px is not None:
                px[...] = x_in
                ph[...] = h_op

            cur = y.astype(op_dtype)

        y_ref[...] = cur.astype(y_ref.dtype)

    return kernel


# ------------------------------- wrapper ------------------------------------ #

def _fold_conv_weight(w, cin_p, cout_p):
    """(Cout, Cin, K) PyTorch conv weight -> folded (cout_p, K*cin_p):
    columns [j*cin_p:(j+1)*cin_p] hold tap j (zero-padded channels)."""
    cout, cin, K = w.shape
    wp = jnp.zeros((cout_p, cin_p, K), w.dtype).at[:cout, :cin, :].set(w)
    return jnp.transpose(wp, (0, 2, 1)).reshape(cout_p, K * cin_p)


def _pad_vec(v, n):
    return jnp.zeros((n,), v.dtype).at[:v.shape[0]].set(v)


def _choose_time_tile(L, cfgs, vmem_budget):
    """Largest lane-aligned time tile that covers the max halo and (roughly)
    fits the per-layer live state in the VMEM budget."""
    max_pad = max(c["pad"] for c in cfgs)
    min_tl = _ru(max(max_pad, 1), 128)
    col_bytes = 0
    for c in cfgs:
        e = c["esize"]
        col_bytes += 2 * (c["cin_p"] + c["cout_p"]) * e            # carried halo tiles
        col_bytes += c["K"] * (c["cin_p"] + c["cout_p"]) * e       # stacked matmul operands
        col_bytes += 4 * 4 * c["cout_p"]                           # f32 temporaries
    col_bytes += 4 * (cfgs[0]["cin_p"] + cfgs[-1]["cout_p"]) * cfgs[0]["esize"]  # 2x-buffered I/O
    tl_cap = max(min_tl, ((vmem_budget // 2) // max(col_bytes, 1)) // 128 * 128)
    TL = max(min(_ru(L, 128), tl_cap, 2048), min_tl)
    return TL, _ru(L, TL)


def tcn_forward(x_ncl, params, kernel_size=2, l_tile=None):
    """x_ncl: PyTorch NCL layout (B, C, L). Returns (B, C_out, L)."""
    del kernel_size  # encoded in the weight shapes
    B, C0, L = x_ncl.shape
    op_dtype = x_ncl.dtype
    esize = jnp.dtype(op_dtype).itemsize
    sub = max(8, 32 // esize)          # sublane multiple for this dtype (f32:8, bf16:16)
    n = len(params)

    # ---- host-side weight relayout / fold / cast (done once, not per tile) ----
    cfgs, flat_w = [], []
    cin = C0
    cin_p = _ru(C0, sub)
    for i, p in enumerate(params):
        cout, _, K = p["w1"].shape
        cout_p = _ru(cout, sub)
        d = 2 ** i
        pad = (K - 1) * d
        has_ds = p["wd"] is not None
        is_last = (i == n - 1)
        cfgs.append(dict(cin_p=cin_p, cout_p=cout_p, K=K, d=d, pad=pad,
                         has_ds=has_ds, is_last=is_last, esize=esize))

        w1f = _fold_conv_weight(p["w1"], cin_p, cout_p)
        b1 = _pad_vec(p["b1"], cout_p)
        if has_ds:
            # Fuse 1x1 downsample as extra output rows applied to the tap-(K-1)
            # (unshifted / current-time) columns of the folded operand.
            ds = jnp.zeros((cout_p, K * cin_p), p["wd"].dtype)
            ds = ds.at[:cout, (K - 1) * cin_p:(K - 1) * cin_p + cin].set(p["wd"][:, :, 0])
            w1f = jnp.concatenate([w1f, ds], axis=0)            # (2*cout_p, K*cin_p)
            b1 = jnp.concatenate([b1, _pad_vec(p["bd"], cout_p)])
        w2f = _fold_conv_weight(p["w2"], cout_p, cout_p)
        b2 = _pad_vec(p["b2"], cout_p)

        flat_w += [w1f.astype(op_dtype), b1.reshape(-1, 1).astype(jnp.float32),
                   w2f.astype(op_dtype), b2.reshape(-1, 1).astype(jnp.float32)]
        cin, cin_p = cout, cout_p

    # ---- generation-aware VMEM budget & time tile ----
    try:
        vmem_cap = int(pltpu.get_tpu_info().vmem_capacity_bytes)
    except Exception:
        vmem_cap = 64 * 1024 * 1024
    vmem_limit = min(100 * 1024 * 1024, (vmem_cap * 3) // 4)   # ~48 MiB on v7x, ~96 MiB on v5e/v6e

    max_pad = max(c["pad"] for c in cfgs)
    if l_tile is None:
        TL, Lp = _choose_time_tile(L, cfgs, vmem_limit)
    else:
        TL, Lp = l_tile, _ru(L, l_tile)
    assert TL % 128 == 0 and TL >= max_pad, (TL, max_pad)
    T = Lp // TL

    # ---- pad input (channels to sublane multiple, time to TL multiple) ----
    C0_p = cfgs[0]["cin_p"]
    x_p = x_ncl
    if (C0_p, Lp) != (C0, L):
        x_p = jnp.pad(x_ncl, ((0, 0), (0, C0_p - C0), (0, Lp - L)))

    # ---- specs ----
    # Weight blocks have constant index maps -> DMA'd once and kept resident.
    # TODO(synk): at production channel counts, single-buffer them
    # (pipeline_mode=pl.Buffered(1)) to reclaim the duplicate VMEM copy.
    in_specs = [pl.BlockSpec((None, C0_p, TL), lambda b, t: (b, 0, t))]
    in_specs += [pl.BlockSpec(w.shape, lambda b, t: (0, 0)) for w in flat_w]
    coutp_last = cfgs[-1]["cout_p"]
    out_spec = pl.BlockSpec((None, coutp_last, TL), lambda b, t: (b, 0, t))

    scratch_shapes = []
    if T > 1:
        for c in cfgs:
            if c["pad"] > 0:
                scratch_shapes.append(pltpu.VMEM((c["cin_p"], TL), op_dtype))
                scratch_shapes.append(pltpu.VMEM((c["cout_p"], TL), op_dtype))

    # ---- cost estimate (helps XLA schedule around the fused call) ----
    flops = 0
    for c in cfgs:
        rows1 = (2 if c["has_ds"] else 1) * c["cout_p"]
        flops += 2 * B * Lp * (rows1 * c["K"] * c["cin_p"]
                               + c["cout_p"] * c["K"] * c["cout_p"])
    bytes_accessed = (int(x_p.size) * esize + B * coutp_last * Lp * esize
                      + sum(int(w.size) * int(w.dtype.itemsize) for w in flat_w))

    kernel = _make_tcn_kernel(tuple(cfgs), TL, T, len(flat_w), op_dtype)

    # TODO(synk): on v7x with B == 1, split the time axis into two halves with a
    # recomputed receptive-field halo so both TensorCores are busy.
    y_p = pl.pallas_call(
        kernel,
        out_shape=jax.ShapeDtypeStruct((B, coutp_last, Lp), x_ncl.dtype),
        grid_spec=pltpu.PrefetchScalarGridSpec(
            num_scalar_prefetch=0,
            grid=(B, T),                               # time innermost (halo carry)
            in_specs=in_specs,
            out_specs=out_spec,
            scratch_shapes=scratch_shapes,
        ),
        compiler_params=pltpu.CompilerParams(
            dimension_semantics=("parallel", "arbitrary"),
            vmem_limit_bytes=int(vmem_limit),
        ),
        cost_estimate=pl.CostEstimate(flops=int(flops), transcendentals=0,
                                      bytes_accessed=int(bytes_accessed)),
    )(x_p, *flat_w)

    cout_real = params[-1]["w1"].shape[0]
    if (coutp_last, Lp) != (cout_real, L):
        y_p = y_p[:, :cout_real, :L]
    return y_p


# --------------------------- parameters (glue) ------------------------------ #

def weight_norm_weight(v, g):
    """PyTorch weight_norm (dim=0): W = g * v / ||v||, norm over (Cin, K)."""
    norm = jnp.sqrt(jnp.sum(v * v, axis=(1, 2), keepdims=True))
    return v * (g.reshape(-1, 1, 1) / norm)


def init_params(key, num_inputs, num_channels, kernel_size):
    params = []
    for i, out_ch in enumerate(num_channels):
        in_ch = num_inputs if i == 0 else num_channels[i - 1]
        key, k1, k2, k3, k4, k5, k6, k7, k8 = jax.random.split(key, 9)
        # conv1 (weight_norm'd): v (Cout, Cin, K), g (Cout,), bias (Cout,)
        v1 = 0.001 * jax.random.normal(k1, (out_ch, in_ch, kernel_size), jnp.float32)
        v1 = v1.at[:, 0, :].add(1.0 / kernel_size)
        g1 = jax.random.uniform(k2, (out_ch,), jnp.float32, 0.5, 1.5)
        b1 = 1e-6 * jax.random.normal(k3, (out_ch,), jnp.float32)
        # conv2 (weight_norm'd): v (Cout, Cout, K)
        v2 = (0.001 * jax.random.normal(k4, (out_ch, out_ch, kernel_size), jnp.float32)
              + 1.0 / kernel_size)
        g2 = jax.random.uniform(k5, (out_ch,), jnp.float32, 0.5, 1.5)
        b2 = 1e-6 * jax.random.normal(k6, (out_ch,), jnp.float32)
        w1 = weight_norm_weight(v1, g1)
        w2 = weight_norm_weight(v2, g2)
        # 1x1 downsample conv only when channel counts differ
        if in_ch != out_ch:
            wd = 0.1 * jax.random.normal(k7, (out_ch, in_ch, 1), jnp.float32)
            bd = 0.1 * jax.random.normal(k8, (out_ch,), jnp.float32)
        else:
            wd, bd = None, None
        params.append(dict(w1=w1, b1=b1, w2=w2, b2=b2, wd=wd, bd=bd))
    return params


# --------------------------- pure-JAX reference ------------------------------ #

def _ref_conv(x, w, b, d):
    K, _, _ = w.shape
    L = x.shape[1]
    pad = (K - 1) * d
    xp = jnp.pad(x, ((0, 0), (pad, 0), (0, 0)))
    out = b[None, None, :]
    for j in range(K):
        out = out + jnp.einsum("blc,cd->bld", xp[:, j * d:j * d + L, :], w[j])
    return out


def ref_forward(x_ncl, params):
    x = jnp.transpose(x_ncl, (0, 2, 1))
    n = len(params)
    for i, p in enumerate(params):
        d = 2 ** i
        last = (i == n - 1)      # TemporalBlock_last: no ReLUs (matches the spec)
        w1 = jnp.transpose(p["w1"], (2, 1, 0))
        w2 = jnp.transpose(p["w2"], (2, 1, 0))
        h = _ref_conv(x, w1, p["b1"], d)
        if not last:
            h = jnp.maximum(h, 0.0)
        out = _ref_conv(h, w2, p["b2"], d)
        if not last:
            out = jnp.maximum(out, 0.0)
        if p["wd"] is not None:
            wd = jnp.transpose(p["wd"], (2, 1, 0))
            res = _ref_conv(x, wd, p["bd"], 1)
        else:
            res = x
        x = out + res
        if not last:
            x = jnp.maximum(x, 0.0)
    return jnp.transpose(x, (0, 2, 1))


# ---------------------------------- main ------------------------------------ #

if __name__ == "__main__":
    B, C_IN, L = 2, 4, 256
    NUM_CHANNELS = [8, 16, 8]
    KERNEL_SIZE = 2

    key = jax.random.PRNGKey(0)
    kp, kx, kx2 = jax.random.split(key, 3)
    params = init_params(kp, C_IN, NUM_CHANNELS, KERNEL_SIZE)
    x = jax.random.normal(kx, (B, C_IN, L), jnp.float32)   # PyTorch NCL input

    ref = ref_forward(x, params)

    # Auto-picked time tile (single full-L tile here) ...
    out_auto = jax.block_until_ready(tcn_forward(x, params, KERNEL_SIZE))
    # ... and an explicit smaller tile to exercise the carried causal halo path.
    out_tiled = jax.block_until_ready(tcn_forward(x, params, KERNEL_SIZE, l_tile=128))

    assert out_auto.shape == (B, NUM_CHANNELS[-1], L), out_auto.shape
    for out in (out_auto, out_tiled):
        err = float(jnp.max(jnp.abs(out - ref)))
        assert jnp.allclose(out, ref, atol=1e-5, rtol=1e-5), f"max err {err}"

    # Ragged L (not a multiple of 128): exercises host-side pad + crop path.
    L2 = 200
    x2 = jax.random.normal(kx2, (B, C_IN, L2), jnp.float32)
    ref2 = ref_forward(x2, params)
    out2 = jax.block_until_ready(tcn_forward(x2, params, KERNEL_SIZE))
    assert out2.shape == (B, NUM_CHANNELS[-1], L2), out2.shape
    err2 = float(jnp.max(jnp.abs(out2 - ref2)))
    assert jnp.allclose(out2, ref2, atol=1e-5, rtol=1e-5), f"max err {err2}"

    # TODO(synk): dropout is stochastic in training mode; treated as identity (eval).
    print("KERNEL_OK")
</pallas_src>

<mosaic_0001>
module attributes {stable_mosaic.version = 11 : i64} {
  func.func @kernel(%arg0: i32, %arg1: i32, %arg2: memref<1x8x256xf32, #tpu.memory_space<vmem>>, %arg3: memref<16x16xf32, #tpu.memory_space<vmem>>, %arg4: memref<16x1xf32, #tpu.memory_space<vmem>>, %arg5: memref<8x16xf32, #tpu.memory_space<vmem>>, %arg6: memref<8x1xf32, #tpu.memory_space<vmem>>, %arg7: memref<32x16xf32, #tpu.memory_space<vmem>>, %arg8: memref<32x1xf32, #tpu.memory_space<vmem>>, %arg9: memref<16x32xf32, #tpu.memory_space<vmem>>, %arg10: memref<16x1xf32, #tpu.memory_space<vmem>>, %arg11: memref<16x32xf32, #tpu.memory_space<vmem>>, %arg12: memref<16x1xf32, #tpu.memory_space<vmem>>, %arg13: memref<8x16xf32, #tpu.memory_space<vmem>>, %arg14: memref<8x1xf32, #tpu.memory_space<vmem>>, %arg15: memref<1x8x256xf32, #tpu.memory_space<vmem>>) attributes {dimension_semantics = [#tpu.dimension_semantics<parallel>, #tpu.dimension_semantics<arbitrary>], iteration_bounds = array<i64: 2, 1>, scalar_prefetch = 0 : i64, scratch_operands = 0 : i64, tpu.core_type = #tpu.core_type<tc>, window_params = [{transform_indices = @transform_0, window_bounds = array<i64: 1, 8, 256>}, {pipeline_mode = #tpu.pipeline_mode<synchronous>, transform_indices = @transform_1, window_bounds = array<i64: 16, 16>}, {pipeline_mode = #tpu.pipeline_mode<synchronous>, transform_indices = @transform_2, window_bounds = array<i64: 16, 1>}, {pipeline_mode = #tpu.pipeline_mode<synchronous>, transform_indices = @transform_3, window_bounds = array<i64: 8, 16>}, {pipeline_mode = #tpu.pipeline_mode<synchronous>, transform_indices = @transform_4, window_bounds = array<i64: 8, 1>}, {pipeline_mode = #tpu.pipeline_mode<synchronous>, transform_indices = @transform_5, window_bounds = array<i64: 32, 16>}, {pipeline_mode = #tpu.pipeline_mode<synchronous>, transform_indices = @transform_6, window_bounds = array<i64: 32, 1>}, {pipeline_mode = #tpu.pipeline_mode<synchronous>, transform_indices = @transform_7, window_bounds = array<i64: 16, 32>}, {pipeline_mode = #tpu.pipeline_mode<synchronous>, transform_indices = @transform_8, window_bounds = array<i64: 16, 1>}, {pipeline_mode = #tpu.pipeline_mode<synchronous>, transform_indices = @transform_9, window_bounds = array<i64: 16, 32>}, {pipeline_mode = #tpu.pipeline_mode<synchronous>, transform_indices = @transform_10, window_bounds = array<i64: 16, 1>}, {pipeline_mode = #tpu.pipeline_mode<synchronous>, transform_indices = @transform_11, window_bounds = array<i64: 8, 16>}, {pipeline_mode = #tpu.pipeline_mode<synchronous>, transform_indices = @transform_12, window_bounds = array<i64: 8, 1>}, {transform_indices = @transform_13, window_bounds = array<i64: 1, 8, 256>}]} {
    %c0 = arith.constant 0 : index
    %c0_0 = arith.constant 0 : index
    %c0_1 = arith.constant 0 : index
    %0 = vector.load %arg2[%c0, %c0_0, %c0_1] : memref<1x8x256xf32, #tpu.memory_space<vmem>>, vector<1x8x256xf32>
    %1 = vector.shape_cast %0 : vector<1x8x256xf32> to vector<8x256xf32>
    %c1_i32 = arith.constant 1 : i32
    %2 = tpu.dynamic_rotate %1 by %c1_i32 dim 1 : vector<8x256xf32>, i32 -> vector<8x256xf32>
    %cst = arith.constant 0.000000e+00 : f32
    %3 = vector.broadcast %cst : f32 to vector<8x256xf32>
    %4 = tpu.iota {dimensions = array<i32: 1>} : vector<8x256xi32>
    %c1_i32_2 = arith.constant 1 : i32
    %5 = vector.broadcast %c1_i32_2 : i32 to vector<8x256xi32>
    %6 = arith.cmpi slt, %4, %5 : vector<8x256xi32>
    %7 = arith.select %6, %3, %2 : vector<8x256xi1>, vector<8x256xf32>
    %8 = tpu.concatenate %7, %1 in 0 : vector<8x256xf32>, vector<8x256xf32> -> vector<16x256xf32>
    %c0_3 = arith.constant 0 : index
    %c0_4 = arith.constant 0 : index
    %9 = vector.load %arg3[%c0_3, %c0_4] : memref<16x16xf32, #tpu.memory_space<vmem>>, vector<16x16xf32>
    %cst_5 = arith.constant dense<0.000000e+00> : vector<16x256xf32>
    %10 = tpu.matmul %9, %8, %cst_5 {dimension_numbers = #tpu.dot_dimension_numbers<[1], [0], [0], [1], [0, 0, 1, 1], [], []>} : vector<16x16xf32>, vector<16x256xf32>, vector<16x256xf32> -> vector<16x256xf32>
    %c0_6 = arith.constant 0 : index
    %c0_7 = arith.constant 0 : index
    %11 = vector.load %arg4[%c0_6, %c0_7] : memref<16x1xf32, #tpu.memory_space<vmem>>, vector<16x1xf32>
    %12 = vector.broadcast %11 : vector<16x1xf32> to vector<16x256xf32>
    %13 = arith.addf %10, %12 : vector<16x256xf32>
    %14 = vector.extract_strided_slice %13 {offsets = [0, 0], sizes = [8, 256], strides = [1, 1]} : vector<16x256xf32> to vector<8x256xf32>
    %15 = vector.extract_strided_slice %13 {offsets = [8, 0], sizes = [8, 256], strides = [1, 1]} : vector<16x256xf32> to vector<8x256xf32>
    %cst_8 = arith.constant 0.000000e+00 : f32
    %16 = vector.broadcast %cst_8 : f32 to vector<8x256xf32>
    %17 = arith.maximumf %14, %16 : vector<8x256xf32>
    %c1_i32_9 = arith.constant 1 : i32
    %18 = tpu.dynamic_rotate %17 by %c1_i32_9 dim 1 : vector<8x256xf32>, i32 -> vector<8x256xf32>
    %cst_10 = arith.constant 0.000000e+00 : f32
    %19 = vector.broadcast %cst_10 : f32 to vector<8x256xf32>
    %20 = tpu.iota {dimensions = array<i32: 1>} : vector<8x256xi32>
    %c1_i32_11 = arith.constant 1 : i32
    %21 = vector.broadcast %c1_i32_11 : i32 to vector<8x256xi32>
    %22 = arith.cmpi slt, %20, %21 : vector<8x256xi32>
    %23 = arith.select %22, %19, %18 : vector<8x256xi1>, vector<8x256xf32>
    %24 = tpu.concatenate %23, %17 in 0 : vector<8x256xf32>, vector<8x256xf32> -> vector<16x256xf32>
    %c0_12 = arith.constant 0 : index
    %c0_13 = arith.constant 0 : index
    %25 = vector.load %arg5[%c0_12, %c0_13] : memref<8x16xf32, #tpu.memory_space<vmem>>, vector<8x16xf32>
    %cst_14 = arith.constant dense<0.000000e+00> : vector<8x256xf32>
    %26 = tpu.matmul %25, %24, %cst_14 {dimension_numbers = #tpu.dot_dimension_numbers<[1], [0], [0], [1], [0, 0, 1, 1], [], []>} : vector<8x16xf32>, vector<16x256xf32>, vector<8x256xf32> -> vector<8x256xf32>
    %c0_15 = arith.constant 0 : index
    %c0_16 = arith.constant 0 : index
    %27 = vector.load %arg6[%c0_15, %c0_16] : memref<8x1xf32, #tpu.memory_space<vmem>>, vector<8x1xf32>
    %28 = vector.broadcast %27 : vector<8x1xf32> to vector<8x256xf32>
    %29 = arith.addf %26, %28 : vector<8x256xf32>
    %cst_17 = arith.constant 0.000000e+00 : f32
    %30 = vector.broadcast %cst_17 : f32 to vector<8x256xf32>
    %31 = arith.maximumf %29, %30 : vector<8x256xf32>
    %32 = arith.addf %31, %15 : vector<8x256xf32>
    %cst_18 = arith.constant 0.000000e+00 : f32
    %33 = vector.broadcast %cst_18 : f32 to vector<8x256xf32>
    %34 = arith.maximumf %32, %33 : vector<8x256xf32>
    %c2_i32 = arith.constant 2 : i32
    %35 = tpu.dynamic_rotate %34 by %c2_i32 dim 1 : vector<8x256xf32>, i32 -> vector<8x256xf32>
    %cst_19 = arith.constant 0.000000e+00 : f32
    %36 = vector.broadcast %cst_19 : f32 to vector<8x256xf32>
    %37 = tpu.iota {dimensions = array<i32: 1>} : vector<8x256xi32>
    %c2_i32_20 = arith.constant 2 : i32
    %38 = vector.broadcast %c2_i32_20 : i32 to vector<8x256xi32>
    %39 = arith.cmpi slt, %37, %38 : vector<8x256xi32>
    %40 = arith.select %39, %36, %35 : vector<8x256xi1>, vector<8x256xf32>
    %41 = tpu.concatenate %40, %34 in 0 : vector<8x256xf32>, vector<8x256xf32> -> vector<16x256xf32>
    %c0_21 = arith.constant 0 : index
    %c0_22 = arith.constant 0 : index
    %42 = vector.load %arg7[%c0_21, %c0_22] : memref<32x16xf32, #tpu.memory_space<vmem>>, vector<32x16xf32>
    %cst_23 = arith.constant dense<0.000000e+00> : vector<32x256xf32>
    %43 = tpu.matmul %42, %41, %cst_23 {dimension_numbers = #tpu.dot_dimension_numbers<[1], [0], [0], [1], [0, 0, 1, 1], [], []>} : vector<32x16xf32>, vector<16x256xf32>, vector<32x256xf32> -> vector<32x256xf32>
    %c0_24 = arith.constant 0 : index
    %c0_25 = arith.constant 0 : index
    %44 = vector.load %arg8[%c0_24, %c0_25] : memref<32x1xf32, #tpu.memory_space<vmem>>, vector<32x1xf32>
    %45 = vector.broadcast %44 : vector<32x1xf32> to vector<32x256xf32>
    %46 = arith.addf %43, %45 : vector<32x256xf32>
    %47 = vector.extract_strided_slice %46 {offsets = [0, 0], sizes = [16, 256], strides = [1, 1]} : vector<32x256xf32> to vector<16x256xf32>
    %48 = vector.extract_strided_slice %46 {offsets = [16, 0], sizes = [16, 256], strides = [1, 1]} : vector<32x256xf32> to vector<16x256xf32>
    %cst_26 = arith.constant 0.000000e+00 : f32
    %49 = vector.broadcast %cst_26 : f32 to vector<16x256xf32>
    %50 = arith.maximumf %47, %49 : vector<16x256xf32>
    %c2_i32_27 = arith.constant 2 : i32
    %51 = tpu.dynamic_rotate %50 by %c2_i32_27 dim 1 : vector<16x256xf32>, i32 -> vector<16x256xf32>
    %cst_28 = arith.constant 0.000000e+00 : f32
    %52 = vector.broadcast %cst_28 : f32 to vector<16x256xf32>
    %53 = tpu.iota {dimensions = array<i32: 1>} : vector<16x256xi32>
    %c2_i32_29 = arith.constant 2 : i32
    %54 = vector.broadcast %c2_i32_29 : i32 to vector<16x256xi32>
    %55 = arith.cmpi slt, %53, %54 : vector<16x256xi32>
    %56 = arith.select %55, %52, %51 : vector<16x256xi1>, vector<16x256xf32>
    %57 = tpu.concatenate %56, %50 in 0 : vector<16x256xf32>, vector<16x256xf32> -> vector<32x256xf32>
    %c0_30 = arith.constant 0 : index
    %c0_31 = arith.constant 0 : index
    %58 = vector.load %arg9[%c0_30, %c0_31] : memref<16x32xf32, #tpu.memory_space<vmem>>, vector<16x32xf32>
    %cst_32 = arith.constant dense<0.000000e+00> : vector<16x256xf32>
    %59 = tpu.matmul %58, %57, %cst_32 {dimension_numbers = #tpu.dot_dimension_numbers<[1], [0], [0], [1], [0, 0, 1, 1], [], []>} : vector<16x32xf32>, vector<32x256xf32>, vector<16x256xf32> -> vector<16x256xf32>
    %c0_33 = arith.constant 0 : index
    %c0_34 = arith.constant 0 : index
    %60 = vector.load %arg10[%c0_33, %c0_34] : memref<16x1xf32, #tpu.memory_space<vmem>>, vector<16x1xf32>
    %61 = vector.broadcast %60 : vector<16x1xf32> to vector<16x256xf32>
    %62 = arith.addf %59, %61 : vector<16x256xf32>
    %cst_35 = arith.constant 0.000000e+00 : f32
    %63 = vector.broadcast %cst_35 : f32 to vector<16x256xf32>
    %64 = arith.maximumf %62, %63 : vector<16x256xf32>
    %65 = arith.addf %64, %48 : vector<16x256xf32>
    %cst_36 = arith.constant 0.000000e+00 : f32
    %66 = vector.broadcast %cst_36 : f32 to vector<16x256xf32>
    %67 = arith.maximumf %65, %66 : vector<16x256xf32>
    %c4_i32 = arith.constant 4 : i32
    %68 = tpu.dynamic_rotate %67 by %c4_i32 dim 1 : vector<16x256xf32>, i32 -> vector<16x256xf32>
    %cst_37 = arith.constant 0.000000e+00 : f32
    %69 = vector.broadcast %cst_37 : f32 to vector<16x256xf32>
    %70 = tpu.iota {dimensions = array<i32: 1>} : vector<16x256xi32>
    %c4_i32_38 = arith.constant 4 : i32
    %71 = vector.broadcast %c4_i32_38 : i32 to vector<16x256xi32>
    %72 = arith.cmpi slt, %70, %71 : vector<16x256xi32>
    %73 = arith.select %72, %69, %68 : vector<16x256xi1>, vector<16x256xf32>
    %74 = tpu.concatenate %73, %67 in 0 : vector<16x256xf32>, vector<16x256xf32> -> vector<32x256xf32>
    %c0_39 = arith.constant 0 : index
    %c0_40 = arith.constant 0 : index
    %75 = vector.load %arg11[%c0_39, %c0_40] : memref<16x32xf32, #tpu.memory_space<vmem>>, vector<16x32xf32>
    %cst_41 = arith.constant dense<0.000000e+00> : vector<16x256xf32>
    %76 = tpu.matmul %75, %74, %cst_41 {dimension_numbers = #tpu.dot_dimension_numbers<[1], [0], [0], [1], [0, 0, 1, 1], [], []>} : vector<16x32xf32>, vector<32x256xf32>, vector<16x256xf32> -> vector<16x256xf32>
    %c0_42 = arith.constant 0 : index
    %c0_43 = arith.constant 0 : index
    %77 = vector.load %arg12[%c0_42, %c0_43] : memref<16x1xf32, #tpu.memory_space<vmem>>, vector<16x1xf32>
    %78 = vector.broadcast %77 : vector<16x1xf32> to vector<16x256xf32>
    %79 = arith.addf %76, %78 : vector<16x256xf32>
    %80 = vector.extract_strided_slice %79 {offsets = [0, 0], sizes = [8, 256], strides = [1, 1]} : vector<16x256xf32> to vector<8x256xf32>
    %81 = vector.extract_strided_slice %79 {offsets = [8, 0], sizes = [8, 256], strides = [1, 1]} : vector<16x256xf32> to vector<8x256xf32>
    %c4_i32_44 = arith.constant 4 : i32
    %82 = tpu.dynamic_rotate %80 by %c4_i32_44 dim 1 : vector<8x256xf32>, i32 -> vector<8x256xf32>
    %cst_45 = arith.constant 0.000000e+00 : f32
    %83 = vector.broadcast %cst_45 : f32 to vector<8x256xf32>
    %84 = tpu.iota {dimensions = array<i32: 1>} : vector<8x256xi32>
    %c4_i32_46 = arith.constant 4 : i32
    %85 = vector.broadcast %c4_i32_46 : i32 to vector<8x256xi32>
    %86 = arith.cmpi slt, %84, %85 : vector<8x256xi32>
    %87 = arith.select %86, %83, %82 : vector<8x256xi1>, vector<8x256xf32>
    %88 = tpu.concatenate %87, %80 in 0 : vector<8x256xf32>, vector<8x256xf32> -> vector<16x256xf32>
    %c0_47 = arith.constant 0 : index
    %c0_48 = arith.constant 0 : index
    %89 = vector.load %arg13[%c0_47, %c0_48] : memref<8x16xf32, #tpu.memory_space<vmem>>, vector<8x16xf32>
    %cst_49 = arith.constant dense<0.000000e+00> : vector<8x256xf32>
    %90 = tpu.matmul %89, %88, %cst_49 {dimension_numbers = #tpu.dot_dimension_numbers<[1], [0], [0], [1], [0, 0, 1, 1], [], []>} : vector<8x16xf32>, vector<16x256xf32>, vector<8x256xf32> -> vector<8x256xf32>
    %c0_50 = arith.constant 0 : index
    %c0_51 = arith.constant 0 : index
    %91 = vector.load %arg14[%c0_50, %c0_51] : memref<8x1xf32, #tpu.memory_space<vmem>>, vector<8x1xf32>
    %92 = vector.broadcast %91 : vector<8x1xf32> to vector<8x256xf32>
    %93 = arith.addf %90, %92 : vector<8x256xf32>
    %94 = arith.addf %93, %81 : vector<8x256xf32>
    %c0_52 = arith.constant 0 : index
    %c0_53 = arith.constant 0 : index
    %c0_54 = arith.constant 0 : index
    %95 = vector.load %arg15[%c0_52, %c0_53, %c0_54] : memref<1x8x256xf32, #tpu.memory_space<vmem>>, vector<1x8x256xf32>
    %96 = vector.shape_cast %95 : vector<1x8x256xf32> to vector<8x256xf32>
    %97 = vector.shape_cast %94 : vector<8x256xf32> to vector<1x8x256xf32>
    tpu.vector_store %arg15[%c0_52, %c0_53, %c0_54], %97 {strides = array<i32>} : memref<1x8x256xf32, #tpu.memory_space<vmem>>, vector<1x8x256xf32>,
    return
  }
  func.func @transform_0(%arg0: i32, %arg1: i32) -> (i32, i32, i32) {
    %c0_i32 = arith.constant 0 : i32
    %c0_i32_0 = arith.constant 0 : i32
    return %arg0, %c0_i32, %arg1 : i32, i32, i32
  }
  func.func @transform_1(%arg0: i32, %arg1: i32) -> (i32, i32) {
    %c0_i32 = arith.constant 0 : i32
    %c0_i32_0 = arith.constant 0 : i32
    %c0_i32_1 = arith.constant 0 : i32
    return %c0_i32, %c0_i32_0 : i32, i32
  }
  func.func @transform_2(%arg0: i32, %arg1: i32) -> (i32, i32) {
    %c0_i32 = arith.constant 0 : i32
    %c0_i32_0 = arith.constant 0 : i32
    %c0_i32_1 = arith.constant 0 : i32
    return %c0_i32, %c0_i32_0 : i32, i32
  }
  func.func @transform_3(%arg0: i32, %arg1: i32) -> (i32, i32) {
    %c0_i32 = arith.constant 0 : i32
    %c0_i32_0 = arith.constant 0 : i32
    %c0_i32_1 = arith.constant 0 : i32
    return %c0_i32, %c0_i32_0 : i32, i32
  }
  func.func @transform_4(%arg0: i32, %arg1: i32) -> (i32, i32) {
    %c0_i32 = arith.constant 0 : i32
    %c0_i32_0 = arith.constant 0 : i32
    %c0_i32_1 = arith.constant 0 : i32
    return %c0_i32, %c0_i32_0 : i32, i32
  }
  func.func @transform_5(%arg0: i32, %arg1: i32) -> (i32, i32) {
    %c0_i32 = arith.constant 0 : i32
    %c0_i32_0 = arith.constant 0 : i32
    %c0_i32_1 = arith.constant 0 : i32
    return %c0_i32, %c0_i32_0 : i32, i32
  }
  func.func @transform_6(%arg0: i32, %arg1: i32) -> (i32, i32) {
    %c0_i32 = arith.constant 0 : i32
    %c0_i32_0 = arith.constant 0 : i32
    %c0_i32_1 = arith.constant 0 : i32
    return %c0_i32, %c0_i32_0 : i32, i32
  }
  func.func @transform_7(%arg0: i32, %arg1: i32) -> (i32, i32) {
    %c0_i32 = arith.constant 0 : i32
    %c0_i32_0 = arith.constant 0 : i32
    %c0_i32_1 = arith.constant 0 : i32
    return %c0_i32, %c0_i32_0 : i32, i32
  }
  func.func @transform_8(%arg0: i32, %arg1: i32) -> (i32, i32) {
    %c0_i32 = arith.constant 0 : i32
    %c0_i32_0 = arith.constant 0 : i32
    %c0_i32_1 = arith.constant 0 : i32
    return %c0_i32, %c0_i32_0 : i32, i32
  }
  func.func @transform_9(%arg0: i32, %arg1: i32) -> (i32, i32) {
    %c0_i32 = arith.constant 0 : i32
    %c0_i32_0 = arith.constant 0 : i32
    %c0_i32_1 = arith.constant 0 : i32
    return %c0_i32, %c0_i32_0 : i32, i32
  }
  func.func @transform_10(%arg0: i32, %arg1: i32) -> (i32, i32) {
    %c0_i32 = arith.constant 0 : i32
    %c0_i32_0 = arith.constant 0 : i32
    %c0_i32_1 = arith.constant 0 : i32
    return %c0_i32, %c0_i32_0 : i32, i32
  }
  func.func @transform_11(%arg0: i32, %arg1: i32) -> (i32, i32) {
    %c0_i32 = arith.constant 0 : i32
    %c0_i32_0 = arith.constant 0 : i32
    %c0_i32_1 = arith.constant 0 : i32
    return %c0_i32, %c0_i32_0 : i32, i32
  }
  func.func @transform_12(%arg0: i32, %arg1: i32) -> (i32, i32) {
    %c0_i32 = arith.constant 0 : i32
    %c0_i32_0 = arith.constant 0 : i32
    %c0_i32_1 = arith.constant 0 : i32
    return %c0_i32, %c0_i32_0 : i32, i32
  }
  func.func @transform_13(%arg0: i32, %arg1: i32) -> (i32, i32, i32) {
    %c0_i32 = arith.constant 0 : i32
    %c0_i32_0 = arith.constant 0 : i32
    return %arg0, %c0_i32, %arg1 : i32, i32, i32
  }
}

</mosaic_0001>

<bundles_post_ra>
// kernel: tpu_custom_call.1
= control target key start
LH: loop header
LB: loop body
LE: loop exit
PB: predicated region body
PF: predicated region fallthrough
CT: control target
= control target key end

     0   :  { %s1791_s0 = inlined_call_operand.vmem [shape: f32[2,8,256], index: 0, kind: input, shape index: {}]   ;;  %s1792_s1 = inlined_call_operand.vmem [shape: f32[16,16], index: 1, kind: input, shape index: {}]   ;;  %s1793_s2 = inlined_call_operand.vmem [shape: f32[16,1], index: 2, kind: input, shape index: {}]   ;;  %s1794_s3 = inlined_call_operand.vmem [shape: f32[8,16], index: 3, kind: input, shape index: {}]   ;;  %s1795_s4 = inlined_call_operand.vmem [shape: f32[8,1], index: 4, kind: input, shape index: {}]   ;;  %s1796_s5 = inlined_call_operand.vmem [shape: f32[32,16], index: 5, kind: input, shape index: {}]   ;;  %s1797_s6 = inlined_call_operand.vmem [shape: f32[32,1], index: 6, kind: input, shape index: {}]   ;;  %s1798_s7 = inlined_call_operand.vmem [shape: f32[16,32], index: 7, kind: input, shape index: {}]   ;;  %s1799_s8 = inlined_call_operand.vmem [shape: f32[16,1], index: 8, kind: input, shape index: {}]   ;;  %s1800_s9 = inlined_call_operand.vmem [shape: f32[16,32], index: 9, kind: input, shape index: {}]   ;;  %s1801_s10 = inlined_call_operand.vmem [shape: f32[16,1], index: 10, kind: input, shape index: {}]   ;;  %s1802_s11 = inlined_call_operand.vmem [shape: f32[8,16], index: 11, kind: input, shape index: {}]   ;;  %s1803_s12 = inlined_call_operand.vmem [shape: f32[8,1], index: 12, kind: input, shape index: {}]   ;;  %s1804_s13 = inlined_call_operand.hbm [shape: f32[2,8,256], index: 13, kind: output, shape index: {}]  }
   0x1   :  { %1806 = sst [smem:[#allocation6_spill]] %s1791_s0 }
   0x2   :  { %1807 = sst [smem:[#allocation7_spill]] %s1792_s1 }
   0x3   :  { %1808 = sst [smem:[#allocation8_spill]] %s1793_s2 }
   0x4   :  { %1809 = sst [smem:[#allocation9_spill]] %s1794_s3 }
   0x5   :  { %18 = vsyncpa [#allocation3], 0 }
   0x6   :  { %20 = vsyncpa [#allocation3 + $0x1], 0  ;;  %s1509_s25 = smov 0   ;;  %s1511_s26 = smov 0  }
   0x7   :  { %s1513_s27 = smov 0   ;;  %s1515_s28 = smov 0  }
   0x8   :  { %s1517_s29 = smov 0   ;;  %s1519_s30 = smov 0  }
   0x9 LB: > { %s1250_s14 = sadd.s32 4294967295, %s1431_s30   ;;  %s1251_s15 = sadd.s32 4294967294, %s1431_s30   ;;  %s1431_s30 = sphi %s1519_s30, %s26_s30   ;;  %s1427_s29 = sphi %s1517_s29, %s1828_s29   ;;  %s1423_s28 = sphi %s1515_s28, %s1827_s28   ;;  %s1419_s27 = sphi %s1513_s27, %s1826_s27   ;;  %s1415_s26 = sphi %s1511_s26, %s1825_s26   ;;  %s1411_s25 = sphi %s1509_s25, %s1824_s25  }
   0xa   : > { %s38_s16 = sadd.s32 1, %s1427_s29  ;;  %s327_s17 = sadd.s32 1, %s1419_s27 }
   0xb   : > { %p40_p0 = scmp.ge.s32.totalorder %s38_s16, 2  ;;  %p337_p1 = scmp.ne.s32.totalorder %s1419_s27, %s1415_s26 }
   0xc   : > { %p338_p2 = scmp.eq.s32.totalorder %s1250_s14, 1  ;;  %p343_p3 = scmp.ne.s32.totalorder %s1415_s26, %s1411_s25 }
   0xd   : > { %s1830_s16 = smov (%p40_p0, %s38_s16), 0  ;;  %p344_p5 = scmp.eq.s32.totalorder %s1251_s15, 1 }
   0xe   : > { %1810 = sst [smem:[#allocation5_spill]] %s1830_s16  ;;  %p1549_p4 = por %p338_p2, %p337_p1 }
   0xf   : > { %s322_s19 = ssub.s32 %s1427_s29, %s1830_s16  ;;  %p1254_p6 = scmp.ge.s32.totalorder %s1431_s30, 1 }
  0x10   : > { %p325_p7 = scmp.eq.s32.totalorder %s322_s19, 0  ;;  %p1556_p8 = por %p344_p5, %p343_p3 }
  0x11   : > { %p411_p9 = scmp.lt.s32.totalorder %s1431_s30, 3 }
  0x12   : > { %s1562_s21 = scalar_select %p325_p7, %s1419_s27, %s327_s17  }
  0x13   : > { %p412_p10 = pnand %p1254_p6, %p411_p9 }
  0x14   : > { %p460_p11 = scmp.lt.s32.totalorder (!%p412_p10), %s1423_s28, 1  ;;  %s1813_s2 = sld [smem:[#allocation8_spill]] (!%p412_p10) }
  0x15   : > { %415 = sbr.rel (%p412_p10) target bundleno = 1974 (0x7b6), region = 72  ;;  %s1814_s0 = sld [smem:[#allocation6_spill]] (!%p412_p10) }
  0x16   : > { %s1435_s16 = smov (!%p412_p10), 1   ;;  %s1817_s1 = sld [smem:[#allocation7_spill]] (!%p412_p10) }
  0x17   : > { %s1818_s3 = sld [smem:[#allocation9_spill]] (!%p412_p10)  ;;  %s1436_s15 = smov (!%p412_p10), 2  }
  0x1a   : > { %v1433_v0 = vmov 0.0   ;;  %v487_v1 = vld [vmem:[%s1813_s2] sm:$0xff]  ;;  %s461_s24 = scalar_select %p460_p11, %s1423_s28, 1  ;;  %v1434_v2 = vmov 0   ;;  %v476_v5 = vlaneseq  ;;  %vm499_vm2 = vcmask 130048   ;;  %v488_v22 = vld [vmem:[%s1813_s2 + $0x8] sm:$0xff] }
  0x1b   : > { %570 = vmatprep.mubr.f32.mxu0 %v1433_v0  ;;  %667 = vmatprep.mubr.f32.mxu1 %v1433_v0  ;;  %v594_v21 = vld [vmem:[%s1795_s4] sm:$0xff]  ;;  %v695_v23 = vld [vmem:[%s1797_s6 + $0x8] sm:$0xff]  ;;  %v692_v53 = vld [vmem:[%s1796_s5 + $0x10] sm:$0xff]  ;;  %vm853_vm5 = vcmask 261120  }
  0x1c   : > { %1353 = vset.pattern.permute.xlu1 %v1434_v2  ;;  %1354 = vset.pattern.permute.xlu0 %v1434_v2  ;;  %s1291_s14 = sshll.u32 %s461_s24, 4  ;;  %v1576_v6 = vand.u32 127, %v476_v5  ;;  %v485_v12 = vld [vmem:[%s1817_s1] sm:$0xff]  ;;  %v486_v13 = vld [vmem:[%s1817_s1 + $0x8] sm:$0xff]  ;;  %v693_v54 = vld [vmem:[%s1796_s5 + $0x18] sm:$0xff] }
  0x1d   : > { %491 = vperm.xlu1 %1353, %v487_v1   ;;  %s467_s19 = scalar_lea.vmem %s1814_s0, %s1291_s14  ;;  %v593_v28 = vld [vmem:[%s1818_s3] sm:$0xff]  ;;  %v691_v52 = vld [vmem:[%s1796_s5 + $0x8] sm:$0xff] }
  0x1e   : > { %v470_v3 = vld [vmem:[%s467_s19] sm:$0xff]  ;;  %v471_v4 = vld [vmem:[%s467_s19 + $0x8] sm:$0xff]  ;;  %vm478_vm0 = vcmp.lt.s32.totalorder %v1576_v6, 1  ;;  %vm684_vm3 = vcmp.lt.s32.totalorder %v1576_v6, 2  ;;  %vm957_vm6 = vcmp.lt.s32.totalorder %v1576_v6, 4 }
  0x1f   : > { %472 = vrot.lane.b32.xlu0 %v470_v3, %s1435_s16  ;;  %534 = vmatprep.subr.mxu0 %v471_v4  ;;  %vm1581_vm1 = vmneg %vm478_vm0  ;;  %v694_v45 = vld [vmem:[%s1797_s6] sm:$0xff] }
  0x20   : > { %535 = vmatpush1.msra.mxu0 %v470_v3  ;;  %vm1631_vm4 = vmneg %vm684_vm3  ;;  %v690_v51 = vld [vmem:[%s1796_s5] sm:$0xff] }
  0x21   : > { %v841_v9 = vld [vmem:[%s1799_s8] sm:$0xff]  ;;  %vm1709_vm7 = vmneg %vm957_vm6 }
  0x23   : > { %474 = vrot.lane.b32.xlu0 %v471_v4, %s1435_s16 }
  0x91   : > { %v473_v7 = vpop.permute.xlu0 %472 }
  0x95   : > { %v475_v8 = vpop.permute.xlu0 %474 }
  0x96   : > { %v480_v10 = vsel %vm478_vm0, %v475_v8, %v473_v7  ;;  %v479_v11 = vsel %vm478_vm0, %v473_v7, %v475_v8  ;;  %v842_v7 = vld [vmem:[%s1799_s8 + $0x8] sm:$0xff]  ;;  %v697_v8 = vld [vmem:[%s1797_s6 + $0x18] sm:$0xff] }
  0x97   : > { %536 = vmatprep.subr.mxu0 %v479_v11 }
  0x98   : > { %1259 = vmatpush1.msk.msra.mxu0 %vm1581_vm1, %v480_v10  ;;  %v492_v14 = vpop.permute.xlu1 %491  ;;  %v696_v10 = vld [vmem:[%s1797_s6 + $0x10] sm:$0xff] }
  0x99   : > { %1260 = vmatmul.mubr.msk.f32.vlgmr.msra.gmra.mxu0 %vm499_vm2, %v485_v12 }
  0x9a   : > { %576 = vmatprep.mubr.f32.mxu0 %v1433_v0 }
  0x9d   : > { %1261 = vmatmul.mubr.msk.f32.gmra.mxu0 %vm499_vm2, %v486_v13 }
  0x9e   : > { %924 = vmatprep.mubr.f32.mxu0 %v1433_v0 }
 0x159   : > { %v572_v15 = vpop.f32.mrf.mxu0 }
 0x15a   : > { %v573_v16 = vadd.f32 %v572_v15, %v492_v14 }
 0x15b   : > { %v574_v17 = vpop.f32.mrf.mxu0 }
 0x15c   : > { %v583_v18 = vmax.f32 %v573_v16, 0.0  ;;  %v575_v19 = vadd.f32 %v574_v17, %v492_v14 }
 0x15d   : > { %v578_v29 = vpop.f32.mrf.mxu0 }
 0x15e   : > { %v584_v20 = vmax.f32 %v575_v19, 0.0  ;;  %585 = vrot.lane.b32.xlu1 %v583_v18, %s1435_s16  ;;  %v839_v19 = vld [vmem:[%s1798_s7] sm:$0xff] }
 0x15f   : > { %v580_v35 = vpop.f32.mrf.mxu0 }
 0x160   : > { %587 = vrot.lane.b32.xlu0 %v584_v20, %s1435_s16  ;;  %631 = vmatprep.subr.mxu1 %v584_v20  ;;  %v840_v20 = vld [vmem:[%s1798_s7 + $0x8] sm:$0xff]  ;;  %s1437_s16 = smov 4  }
 0x161   : > { %632 = vmatpush1.msra.mxu1 %v583_v18 }
 0x162   : > { %597 = vperm.xlu1 %1353, %v594_v21  }
 0x164   : > { %496 = vperm.xlu0 %1354, %v488_v22  }
 0x168   : > { %705 = vperm.xlu0 %1354, %v695_v23  }
 0x1d0   : > { %v586_v24 = vpop.permute.xlu1 %585 }
 0x1d2   : > { %v588_v25 = vpop.permute.xlu0 %587 }
 0x1d3   : > { %v590_v26 = vsel %vm478_vm0, %v588_v25, %v586_v24  ;;  %v589_v27 = vsel %vm478_vm0, %v586_v24, %v588_v25 }
 0x1d4   : > { %633 = vmatprep.subr.mxu1 %v589_v27 }
 0x1d5   : > { %1263 = vmatpush1.msk.msra.mxu1 %vm1581_vm1, %v590_v26 }
 0x1d6   : > { %1264 = vmatmul.mubr.msk.f32.vlgmr.msra.gmra.mxu1 %vm499_vm2, %v593_v28 }
 0x1d7   : > { %794 = vmatprep.mubr.f32.mxu1 %v1433_v0 }
 0x1dd   : > { %v598_v30 = vpop.permute.xlu1 %597 }
 0x1df   : > { %v497_v31 = vpop.permute.xlu0 %496 }
 0x1e0   : > { %v579_v33 = vadd.f32 %v578_v29, %v497_v31  ;;  %v581_v40 = vadd.f32 %v580_v35, %v497_v31 }
 0x1e3   : > { %v706_v57 = vpop.permute.xlu0 %705 }
 0x296   : > { %v669_v32 = vpop.f32.mrf.mxu1 }
 0x297   : > { %v670_v34 = vadd.f32 %v669_v32, %v598_v30 }
 0x298   : > { %v671_v36 = vpop.f32.mrf.mxu1 }
 0x299   : > { %v674_v37 = vmax.f32 %v670_v34, 0.0  ;;  %v672_v38 = vadd.f32 %v671_v36, %v598_v30 }
 0x29b   : > { %v676_v39 = vadd.f32 %v674_v37, %v579_v33  ;;  %v675_v41 = vmax.f32 %v672_v38, 0.0 }
 0x29d   : > { %v678_v42 = vmax.f32 %v676_v39, 0.0  ;;  %v677_v43 = vadd.f32 %v675_v41, %v581_v40 }
 0x29f   : > { %v679_v44 = vmax.f32 %v677_v43, 0.0  ;;  %680 = vrot.lane.b32.xlu1 %v678_v42, %s1436_s15 }
 0x2a1   : > { %758 = vmatprep.subr.mxu1 %v679_v44 }
 0x2a2   : > { %759 = vmatpush1.msra.mxu1 %v678_v42 }
 0x2a3   : > { %682 = vrot.lane.b32.xlu1 %v679_v44, %s1436_s15 }
 0x2a7   : > { %700 = vperm.xlu1 %1353, %v694_v45  }
 0x311   : > { %v681_v46 = vpop.permute.xlu1 %680 }
 0x315   : > { %v683_v47 = vpop.permute.xlu1 %682 }
 0x316   : > { %v686_v49 = vsel %vm684_vm3, %v683_v47, %v681_v46  ;;  %v685_v50 = vsel %vm684_vm3, %v681_v46, %v683_v47 }
 0x317   : > { %760 = vmatprep.subr.mxu1 %v685_v50 }
 0x318   : > { %1266 = vmatpush1.msk.msra.mxu1 %vm1631_vm4, %v686_v49 }
 0x319   : > { %1267 = vmatmul.mubr.msk.f32.vlgmr.msra.gmra.mxu1 %vm499_vm2, %v690_v51 }
 0x31a   : > { %800 = vmatprep.mubr.f32.mxu1 %v1433_v0 }
 0x31d   : > { %1268 = vmatmul.mubr.msk.f32.gmra.mxu1 %vm499_vm2, %v691_v52 }
 0x31e   : > { %806 = vmatprep.mubr.f32.mxu1 %v1433_v0 }
 0x321   : > { %1269 = vmatmul.mubr.msk.f32.gmra.mxu1 %vm499_vm2, %v692_v53  ;;  %v969_v53 = vld [vmem:[%s1801_s10] sm:$0xff] }
 0x322   : > { %812 = vmatprep.mubr.f32.mxu1 %v1433_v0  ;;  %v701_v60 = vpop.permute.xlu1 %700 }
 0x325   : > { %1270 = vmatmul.mubr.msk.f32.gmra.mxu1 %vm499_vm2, %v693_v54 }
 0x326   : > { %1146 = vmatprep.mubr.f32.mxu1 %v1433_v0 }
 0x3d9   : > { %v796_v55 = vpop.f32.mrf.mxu1 }
 0x3da   : > { %v797_v62 = vadd.f32 %v796_v55, %v701_v60 }
 0x3db   : > { %v798_v56 = vpop.f32.mrf.mxu1 }
 0x3dc   : > { %v799_v63 = vadd.f32 %v798_v56, %v701_v60  ;;  %v819_v4 = vmax.f32 %v797_v62, 0.0 }
 0x3dd   : > { %v802_v58 = vpop.f32.mrf.mxu1 }
 0x3de   : > { %v803_v59 = vadd.f32 %v802_v58, %v706_v57  ;;  %v820_v5 = vmax.f32 %v799_v63, 0.0  ;;  %v967_v63 = vld [vmem:[%s1800_s9] sm:$0xff] }
 0x3df   : > { %v804_v61 = vpop.f32.mrf.mxu1 }
 0x3e0   : > { %v821_v1 = vmax.f32 %v803_v59, 0.0  ;;  %v805_v2 = vadd.f32 %v804_v61, %v706_v57 }
 0x3e1   : > { %v808_v21 = vpop.f32.mrf.mxu1 }
 0x3e2   : > { %v822_v3 = vmax.f32 %v805_v2, 0.0  ;;  %825 = vrot.lane.b32.xlu0 %v821_v1, %s1436_s15 }
 0x3e3   : > { %v810_v23 = vpop.f32.mrf.mxu1 }
 0x3e4   : > { %829 = vrot.lane.b32.xlu1 %v822_v3, %s1436_s15  ;;  %884 = vmatprep.subr.mxu0 %v822_v3 }
 0x3e5   : > { %885 = vmatpush1.msra.mxu0 %v821_v1  ;;  %v814_v26 = vpop.f32.mrf.mxu1  ;;  %v968_v1 = vld [vmem:[%s1800_s9 + $0x8] sm:$0xff] }
 0x3e6   : > { %886 = vmatprep.subr.mxu0 %v820_v5  ;;  %823 = vrot.lane.b32.xlu0 %v819_v4, %s1436_s15 }
 0x3e7   : > { %887 = vmatpush1.msra.mxu0 %v819_v4  ;;  %v816_v32 = vpop.f32.mrf.mxu1 }
 0x3e8   : > { %827 = vrot.lane.b32.xlu1 %v820_v5, %s1436_s15  ;;  %s1292_s15 = sshll.u32 %s1423_s28, 8  ;;  %s1438_s28 = smov [#allocation2]  }
 0x3e9   : > { %s1172_s19 = scalar_lea.hbm %s1804_s13, %s1292_s15 }
 0x3ea   : > { %850 = vperm.xlu0 %1354, %v842_v7  }
 0x3ec   : > { %715 = vperm.xlu1 %1353, %v697_v8   ;;  %v970_v8 = vld [vmem:[%s1801_s10 + $0x8] sm:$0xff] }
 0x3ee   : > { %845 = vperm.xlu0 %1354, %v841_v9  }
 0x3f0   : > { %710 = vperm.xlu1 %1353, %v696_v10  }
 0x454   : > { %v826_v11 = vpop.permute.xlu0 %825 }
 0x456   : > { %v830_v12 = vpop.permute.xlu1 %829 }
 0x457   : > { %v834_v13 = vsel %vm684_vm3, %v830_v12, %v826_v11  ;;  %v832_v14 = vsel %vm684_vm3, %v826_v11, %v830_v12 }
 0x458   : > { %888 = vmatprep.subr.mxu0 %v832_v14  ;;  %v824_v15 = vpop.permute.xlu0 %823 }
 0x459   : > { %1272 = vmatpush1.msk.msra.mxu0 %vm1631_vm4, %v834_v13  ;;  %v1072_v13 = vld [vmem:[%s1802_s11] sm:$0xff] }
 0x45a   : > { %v828_v16 = vpop.permute.xlu1 %827 }
 0x45b   : > { %v833_v17 = vsel %vm684_vm3, %v828_v16, %v824_v15  ;;  %v831_v18 = vsel %vm684_vm3, %v824_v15, %v828_v16 }
 0x45c   : > { %890 = vmatprep.subr.mxu0 %v831_v18 }
 0x45d   : > { %1274 = vmatpush1.msk.msra.mxu0 %vm1631_vm4, %v833_v17 }
 0x45e   : > { %1275 = vmatmul.mubr.msk.f32.vlgmr.msra.gmra.mxu0 %vm853_vm5, %v839_v19 }
 0x45f   : > { %930 = vmatprep.mubr.f32.mxu0 %v1433_v0 }
 0x462   : > { %1276 = vmatmul.mubr.msk.f32.gmra.mxu0 %vm853_vm5, %v840_v20 }
 0x463   : > { %1051 = vmatprep.mubr.f32.mxu0 %v1433_v0 }
 0x465   : > { %v851_v22 = vpop.permute.xlu0 %850 }
 0x467   : > { %v716_v24 = vpop.permute.xlu1 %715 }
 0x468   : > { %v815_v34 = vadd.f32 %v814_v26, %v716_v24  ;;  %v817_v41 = vadd.f32 %v816_v32, %v716_v24 }
 0x469   : > { %v846_v27 = vpop.permute.xlu0 %845 }
 0x46b   : > { %v711_v35 = vpop.permute.xlu1 %710 }
 0x46c   : > { %v809_v42 = vadd.f32 %v808_v21, %v711_v35  ;;  %v811_v43 = vadd.f32 %v810_v23, %v711_v35 }
 0x51e   : > { %v926_v25 = vpop.f32.mrf.mxu0 }
 0x51f   : > { %v927_v29 = vadd.f32 %v926_v25, %v846_v27 }
 0x520   : > { %v928_v28 = vpop.f32.mrf.mxu0 }
 0x521   : > { %v929_v30 = vadd.f32 %v928_v28, %v846_v27  ;;  %v937_v37 = vmax.f32 %v927_v29, 0.0 }
 0x522   : > { %v932_v31 = vpop.f32.mrf.mxu0 }
 0x523   : > { %v933_v33 = vadd.f32 %v932_v31, %v851_v22  ;;  %v938_v38 = vmax.f32 %v929_v30, 0.0  ;;  %v941_v46 = vadd.f32 %v937_v37, %v809_v42 }
 0x524   : > { %v934_v36 = vpop.f32.mrf.mxu0 }
 0x525   : > { %v939_v39 = vmax.f32 %v933_v33, 0.0  ;;  %v935_v40 = vadd.f32 %v934_v36, %v851_v22  ;;  %v942_v47 = vadd.f32 %v938_v38, %v811_v43  ;;  %v945_v51 = vmax.f32 %v941_v46, 0.0 }
 0x527   : > { %v943_v44 = vadd.f32 %v939_v39, %v815_v34  ;;  %v940_v45 = vmax.f32 %v935_v40, 0.0  ;;  %v946_v52 = vmax.f32 %v942_v47, 0.0 }
 0x529   : > { %v947_v48 = vmax.f32 %v943_v44, 0.0  ;;  %v944_v49 = vadd.f32 %v940_v45, %v817_v41 }
 0x52b   : > { %v948_v50 = vmax.f32 %v944_v49, 0.0  ;;  %951 = vrot.lane.b32.xlu0 %v947_v48, %s1437_s16 }
 0x52d   : > { %955 = vrot.lane.b32.xlu1 %v948_v50, %s1437_s16  ;;  %1011 = vmatprep.subr.mxu0 %v948_v50 }
 0x52e   : > { %1012 = vmatpush1.msra.mxu0 %v947_v48 }
 0x52f   : > { %1013 = vmatprep.subr.mxu0 %v946_v52  ;;  %949 = vrot.lane.b32.xlu0 %v945_v51, %s1437_s16 }
 0x530   : > { %1014 = vmatpush1.msra.mxu0 %v945_v51 }
 0x531   : > { %953 = vrot.lane.b32.xlu1 %v946_v52, %s1437_s16 }
 0x533   : > { %973 = vperm.xlu0 %1354, %v969_v53  }
 0x59d   : > { %v952_v54 = vpop.permute.xlu0 %951 }
 0x59f   : > { %v956_v55 = vpop.permute.xlu1 %955 }
 0x5a0   : > { %v961_v57 = vsel %vm957_vm6, %v956_v55, %v952_v54  ;;  %v959_v58 = vsel %vm957_vm6, %v952_v54, %v956_v55 }
 0x5a1   : > { %1015 = vmatprep.subr.mxu0 %v959_v58  ;;  %v950_v59 = vpop.permute.xlu0 %949 }
 0x5a2   : > { %1278 = vmatpush1.msk.msra.mxu0 %vm1709_vm7, %v961_v57 }
 0x5a3   : > { %v954_v60 = vpop.permute.xlu1 %953 }
 0x5a4   : > { %v960_v61 = vsel %vm957_vm6, %v954_v60, %v950_v59  ;;  %v958_v62 = vsel %vm957_vm6, %v950_v59, %v954_v60 }
 0x5a5   : > { %1017 = vmatprep.subr.mxu0 %v958_v62 }
 0x5a6   : > { %1280 = vmatpush1.msk.msra.mxu0 %vm1709_vm7, %v960_v61 }
 0x5a7   : > { %1281 = vmatmul.mubr.msk.f32.vlgmr.msra.gmra.mxu0 %vm853_vm5, %v967_v63 }
 0x5a8   : > { %1057 = vmatprep.mubr.f32.mxu0 %v1433_v0  ;;  %v1073_v0 = vld [vmem:[%s1803_s12] sm:$0xff] }
 0x5ab   : > { %1282 = vmatmul.mubr.msk.f32.gmra.mxu0 %vm853_vm5, %v968_v1 }
 0x5ae   : > { %v974_v2 = vpop.permute.xlu0 %973 }
 0x667   : > { %v1053_v3 = vpop.f32.mrf.mxu0 }
 0x668   : > { %v1054_v4 = vadd.f32 %v1053_v3, %v974_v2 }
 0x669   : > { %v1055_v5 = vpop.f32.mrf.mxu0 }
 0x66a   : > { %v1056_v7 = vadd.f32 %v1055_v5, %v974_v2  ;;  %1064 = vrot.lane.b32.xlu1 %v1054_v4, %s1437_s16 }
 0x66b   : > { %v1059_v14 = vpop.f32.mrf.mxu0 }
 0x66c   : > { %1066 = vrot.lane.b32.xlu0 %v1056_v7, %s1437_s16  ;;  %1110 = vmatprep.subr.mxu1 %v1056_v7  ;;  %s456_s16 = sand.u32 1, %s1415_s26  }
 0x66d   : > { %1111 = vmatpush1.msra.mxu1 %v1054_v4  ;;  %s1255_s0 = sshll.u32 %s456_s16, 4  ;;  %v1061_v16 = vpop.f32.mrf.mxu0  ;;  %s1158_s22 = scalar_lea.sflag [#allocation3], %s456_s16 }
 0x66e   : > { %978 = vperm.xlu1 %1353, %v970_v8   ;;  %s458_s23 = scalar_lea.vmem [#allocation2], %s1255_s0  ;;  %s1359_s0 = sshll.u32 %s1438_s28, 4  ;;  %s1360_s0 = int_to_ptr.vmem [resolvable:$false] %s1359_s0 }
 0x66f   : > { %s1174_s24 = sshll.u32 %s458_s23, 4  ;;  %s1361_s2 = scalar_lea.vmem %s1360_s0, 512  ;;  %s1175_s24 = int_to_ptr.vmem [resolvable:$true] %s1174_s24 }
 0x670   : > { %1076 = vperm.xlu0 %1354, %v1073_v0   ;;  %s1355_s1 = scalar_lea.vmem %s1175_s24, 256  ;;  %p1362_p1 = scmp.lt.s32.totalorder %s1175_s24, %s1360_s0 }
 0x671   : > { %p1356_p12 = scmp.ne.s32.totalorder %s1175_s24, %s1355_s1  ;;  %p1363_p2 = scmp.lt.s32.totalorder %s1361_s2, %s1355_s1 }
 0x673   : > { %p1357_p13 = pnand %p1356_p12, %p1549_p4  ;;  %p1364_p3 = por %p1363_p2, %p1362_p1 }
 0x675   : > { %p1358_p0 = pneg %p1357_p13 }
 0x677   : > { %p1365_p5 = pnand %p1364_p3, %p1358_p0 }
 0x6dc   : > { %v1065_v9 = vpop.permute.xlu1 %1064 }
 0x6de   : > { %v1067_v10 = vpop.permute.xlu0 %1066 }
 0x6df   : > { %v1069_v11 = vsel %vm957_vm6, %v1067_v10, %v1065_v9  ;;  %v1068_v12 = vsel %vm957_vm6, %v1065_v9, %v1067_v10 }
 0x6e0   : > { %1112 = vmatprep.subr.mxu1 %v1068_v12 }
 0x6e1   : > { %1284 = vmatpush1.msk.msra.mxu1 %vm1709_vm7, %v1069_v11 }
 0x6e2   : > { %1285 = vmatmul.mubr.msk.f32.vlgmr.msra.gmra.mxu1 %vm499_vm2, %v1072_v13 }
 0x6e9   : > { %v979_v15 = vpop.permute.xlu1 %978 }
 0x6ea   : > { %v1060_v6 = vadd.f32 %v1059_v14, %v979_v15  ;;  %v1062_v21 = vadd.f32 %v1061_v16, %v979_v15 }
 0x6eb   : > { %v1077_v17 = vpop.permute.xlu0 %1076 }
 0x7a2   : > { %v1148_v18 = vpop.f32.mrf.mxu1 }
 0x7a3   : > { %v1149_v19 = vadd.f32 %v1148_v18, %v1077_v17 }
 0x7a4   : > { %v1150_v20 = vpop.f32.mrf.mxu1 }
 0x7a5   : > { %v1153_v22 = vadd.f32 %v1149_v19, %v1060_v6  ;;  %v1151_v23 = vadd.f32 %v1150_v20, %v1077_v17 }
 0x7a7   : > { %1155 = vst [vmem:[%s458_s23] sm:$0xff] %v1153_v22  ;;  %v1154_v24 = vadd.f32 %v1151_v23, %v1062_v21 }
 0x7a9   : > { %1156 = vst [vmem:[%s458_s23 + $0x8] sm:$0xff] %v1154_v24 }
 0x7aa   : > { %1368 = shalt.err (!%p1365_p5)
}
 0x7ab   : > { %s1369_s3 = scalar_lea.hbm %s1172_s19, 256  ;;  %s1373_s23 = scalar_lea.hbm %s1804_s13, 512 }
 0x7ac   : > { %p1370_p6 = scmp.ne.s32.totalorder %s1172_s19, %s1369_s3  ;;  %p1374_p10 = scmp.lt.s32.totalorder %s1172_s19, %s1804_s13 }
 0x7ad   : > { %p1375_p11 = scmp.lt.s32.totalorder %s1373_s23, %s1369_s3 }
 0x7ae   : > { %p1371_p7 = pnand %p1370_p6, %p1549_p4 }
 0x7af   : > { %p1376_p12 = por %p1375_p11, %p1374_p10 }
 0x7b0   : > { %p1372_p9 = pneg %p1371_p7 }
 0x7b2   : > { %p1377_p13 = pnand %p1376_p12, %p1372_p9 }
 0x7b4   : > { %1380 = shalt.err (!%p1377_p13)
}
 0x7b5   : > { %1293 = dma.vmem_to_hbm [thread:$0]  (%p1549_p4), %s1175_s24, 256, %s1172_s19, %s1158_s22  }
 0x7b6 PF: > { %p1299_p0 = scmp.ge.s32.totalorder %s1431_s30, 2  ;;  %s1186_s1 = sand.u32 1, %s1411_s25  }
 0x7b7   : > { %s1187_s2 = scalar_lea.sflag [#allocation3], %s1186_s1 }
 0x7b8   : > { %p1296_p1 = pnand %p1299_p0, %p1556_p8 }
 0x7ba   : > { %p1297_p2 = pneg %p1296_p1 }
 0x7bc   : > { %1406 = dma.done.wait (%p1297_p2), %s1187_s2, 256  }
 0x7bd   : > { %1408 = vsyncadd (%p1297_p2), %s1187_s2, 4294967040  ;;  %s26_s30 = sadd.s32 1, %s1431_s30   ;;  %s1823_s3 = sld [smem:[#allocation5_spill]] }
 0x7be   : > { %p23_p3 = scmp.ge.s32.totalorder %s26_s30, 4   ;;  %s1824_s25 = smov %s1415_s26 }
 0x7bf   : > { %s1825_s26 = smov %s1419_s27  ;;  %s1826_s27 = smov %s1562_s21 }
 0x7c0   : > { %s1827_s28 = smov %s1427_s29  ;;  %25 = sbr.rel (!%p23_p3) target bundleno = 9 (0x9), region = 107 }
 0x7c3   : > { %s1828_s29 = smov %s1823_s3 }
 0x7c5   :  { %1192 = vsyncpa [#allocation3], 1 }
 0x7c6   :  { %1194 = vsyncpa [#allocation3 + $0x1], 1 }

</bundles_post_ra>
